<compile_context>
chip_gen: v6e
topology: v6e:2x2x1
jax: 0.10.0
libtpu: 0.0.40
codegen_flags: <defaults>
</compile_context>

<pallas_src>
import functools

import jax
import jax.numpy as jnp
from jax import lax
from jax.experimental import pallas as pl
from jax.experimental.pallas import tpu as pltpu


def _round_up(x, m):
    return ((x + m - 1) // m) * m


# ----------------------------- Pallas kernel ------------------------------ #
def _proj_kernel(p_ref, w_ref, b_ref, o_ref):
    # p_ref: (TM, K) patch tile; w_ref: (K, Np) weights (resident across the
    # grid); b_ref: (1, Np) bias.  One MXU matmul + bias per grid step.
    acc = jnp.dot(p_ref[...], w_ref[...], preferred_element_type=jnp.float32)
    o_ref[...] = (acc + b_ref[...]).astype(o_ref.dtype)


def _proj_matmul(patches, w2d, bias2d, *, tile_m=256):
    """patches (M, K) @ w2d (K, Np) + bias2d (1, Np) -> (M, Np)."""
    M, K = patches.shape
    Np = w2d.shape[1]
    assert Np % 128 == 0  # lane-dense output stores

    # Large M tiles amortize the ~0.35us per-grid-step overhead; clamp to the
    # (8-rounded) problem size so tiny problems run as a single block.
    tile_m = max(8, min(int(tile_m), _round_up(M, 8)))
    grid_m = pl.cdiv(M, tile_m)  # ragged tail handled by Pallas masking

    # Rough VMEM need: double-buffered patch/out tiles + resident weights.
    est_vmem = 4 * (2 * tile_m * K + 2 * tile_m * Np + 2 * (K * Np + Np))
    vmem_limit = int(min(100 * 2**20, max(32 * 2**20, 2 * est_vmem)))

    cost = pl.CostEstimate(
        flops=2 * M * K * Np,
        transcendentals=0,
        bytes_accessed=4 * (M * K + K * Np + Np + M * Np),
    )

    out = pl.pallas_call(
        _proj_kernel,
        out_shape=jax.ShapeDtypeStruct((M, Np), jnp.float32),
        grid_spec=pltpu.PrefetchScalarGridSpec(
            num_scalar_prefetch=0,
            grid=(grid_m,),
            in_specs=[
                pl.BlockSpec((tile_m, K), lambda i: (i, 0)),
                pl.BlockSpec((K, Np), lambda i: (0, 0)),
                pl.BlockSpec((1, Np), lambda i: (0, 0)),
            ],
            out_specs=pl.BlockSpec((tile_m, Np), lambda i: (i, 0)),
        ),
        compiler_params=pltpu.CompilerParams(
            dimension_semantics=("parallel",),
            vmem_limit_bytes=vmem_limit,
        ),
        cost_estimate=cost,
    )(patches, w2d, bias2d)
    return out


# ------------------------------ glue (JAX) -------------------------------- #
def _extract_patches(x_nchw, kh, kw, stride, padding):
    """NCHW image -> (B*OH*OW, kh*kw*C) patch matrix (NHWC internally)."""
    B, C, H, W = x_nchw.shape
    x = jnp.transpose(x_nchw, (0, 2, 3, 1))  # NHWC: channels on the lane axis
    if padding:
        x = jnp.pad(x, ((0, 0), (padding, padding), (padding, padding), (0, 0)))
    Hp, Wp = x.shape[1], x.shape[2]
    OH = (Hp - kh) // stride + 1
    OW = (Wp - kw) // stride + 1
    taps = []
    for i in range(kh):
        for j in range(kw):
            taps.append(x[:, i:i + stride * OH:stride,
                          j:j + stride * OW:stride, :])
    # (B, OH, OW, kh*kw, C): last two axes are contiguous, so flattening to
    # (M, K) is a pure reshape (no extra transpose / HBM pass).
    p = jnp.stack(taps, axis=3)
    patches = p.reshape(B * OH * OW, kh * kw * C)
    return patches, OH, OW


def patch_embed_forward(x, weight, bias, *, patch_size, stride, padding,
                        tile_m=256):
    """PatchEmbed.forward == Conv2d(in_ch, embed_dim, patch_size, stride, padding).

    x: (B, C, H, W) f32 NCHW; weight: (E, C, kh, kw); bias: (E,).
    Returns (B, E, OH, OW) f32 NCHW (the PyTorch module's contract).
    """
    B, C = x.shape[0], x.shape[1]
    E, Cw, kh, kw = weight.shape
    assert C == Cw and kh == patch_size and kw == patch_size
    K = kh * kw * C
    Np = _round_up(E, 128)  # pad embed_dim for lane-dense stores, slice later

    patches, OH, OW = _extract_patches(x, kh, kw, stride, padding)

    # weight (E, C, kh, kw) -> (kh, kw, C, E) -> (K, E), matching the patch
    # K ordering (i, j, c); zero-padding the E axis is numerically exact.
    w2d = jnp.transpose(weight, (2, 3, 1, 0)).reshape(K, E)
    if Np != E:
        w2d = jnp.pad(w2d, ((0, 0), (0, Np - E)))
        bias_p = jnp.pad(bias, (0, Np - E))
    else:
        bias_p = bias

    out = _proj_matmul(patches, w2d, bias_p.reshape(1, Np), tile_m=tile_m)
    out = out[:, :E].reshape(B, OH, OW, E)
    # NCHW to match nn.Conv2d.  (Downstream Pallas consumers would rather use
    # the NHWC slab above; this transpose is kept for module fidelity.)
    return jnp.transpose(out, (0, 3, 1, 2))


# --------------------------------- main ----------------------------------- #
def _reference(x, weight, bias, stride, padding):
    out = lax.conv_general_dilated(
        x, weight, window_strides=(stride, stride),
        padding=[(padding, padding), (padding, padding)],
        dimension_numbers=("NCHW", "OIHW", "NCHW"),
        precision=lax.Precision.HIGHEST)
    return out + bias.reshape(1, -1, 1, 1)  # previous script forgot the bias


if __name__ == "__main__":
    key = jax.random.PRNGKey(0)

    configs = [
        # (B, C, H, W, patch_size, stride, padding, embed_dim)
        (2, 4, 16, 16, 4, 4, 0, 32),   # simple non-overlapping patches
        (2, 3, 16, 16, 7, 4, 2, 32),   # PoolFormer stem config (7, 4, 2), small scale
    ]
    for (B, C, H, W, ps, st, pad, E) in configs:
        key, kx, kw_, kb = jax.random.split(key, 4)
        x = jax.random.normal(kx, (B, C, H, W), dtype=jnp.float32)
        weight = jax.random.normal(kw_, (E, C, ps, ps), dtype=jnp.float32) * 0.05
        bias = jax.random.normal(kb, (E,), dtype=jnp.float32) * 0.05

        fwd = jax.jit(functools.partial(patch_embed_forward,
                                        patch_size=ps, stride=st, padding=pad))
        out = jax.block_until_ready(fwd(x, weight, bias))

        ref = _reference(x, weight, bias, st, pad)
        OH = (H + 2 * pad - ps) // st + 1
        OW = (W + 2 * pad - ps) // st + 1
        assert out.shape == ref.shape == (B, E, OH, OW), (out.shape, ref.shape)
        # Tolerance covers default-precision MXU passes vs HIGHEST-precision ref.
        assert jnp.allclose(out, ref, atol=1e-2, rtol=1e-2), float(
            jnp.max(jnp.abs(out - ref)))

    print("KERNEL_OK")
</pallas_src>

<mosaic_0001>
module attributes {stable_mosaic.version = 11 : i64} {
  func.func @_proj_kernel(%arg0: i32, %arg1: memref<32x64xf32, #tpu.memory_space<vmem>>, %arg2: memref<64x128xf32, #tpu.memory_space<vmem>>, %arg3: memref<1x128xf32, #tpu.memory_space<vmem>>, %arg4: memref<32x128xf32, #tpu.memory_space<vmem>>) attributes {dimension_semantics = [#tpu.dimension_semantics<parallel>], iteration_bounds = array<i64: 1>, scalar_prefetch = 0 : i64, scratch_operands = 0 : i64, tpu.core_type = #tpu.core_type<tc>, window_params = [{transform_indices = @transform_0, window_bounds = array<i64: 32, 64>}, {pipeline_mode = #tpu.pipeline_mode<synchronous>, transform_indices = @transform_1, window_bounds = array<i64: 64, 128>}, {pipeline_mode = #tpu.pipeline_mode<synchronous>, transform_indices = @transform_2, window_bounds = array<i64: 1, 128>}, {transform_indices = @transform_3, window_bounds = array<i64: 32, 128>}]} {
    %c0 = arith.constant 0 : index
    %c0_0 = arith.constant 0 : index
    %0 = vector.load %arg1[%c0, %c0_0] : memref<32x64xf32, #tpu.memory_space<vmem>>, vector<32x64xf32>
    %c0_1 = arith.constant 0 : index
    %c0_2 = arith.constant 0 : index
    %1 = vector.load %arg2[%c0_1, %c0_2] : memref<64x128xf32, #tpu.memory_space<vmem>>, vector<64x128xf32>
    %cst = arith.constant dense<0.000000e+00> : vector<32x128xf32>
    %2 = tpu.matmul %0, %1, %cst {dimension_numbers = #tpu.dot_dimension_numbers<[1], [0], [0], [1], [0, 0, 1, 1], [], []>} : vector<32x64xf32>, vector<64x128xf32>, vector<32x128xf32> -> vector<32x128xf32>
    %c0_3 = arith.constant 0 : index
    %c0_4 = arith.constant 0 : index
    %3 = vector.load %arg3[%c0_3, %c0_4] : memref<1x128xf32, #tpu.memory_space<vmem>>, vector<1x128xf32>
    %4 = vector.broadcast %3 : vector<1x128xf32> to vector<32x128xf32>
    %5 = arith.addf %2, %4 : vector<32x128xf32>
    %c0_5 = arith.constant 0 : index
    %c0_6 = arith.constant 0 : index
    %6 = vector.load %arg4[%c0_5, %c0_6] : memref<32x128xf32, #tpu.memory_space<vmem>>, vector<32x128xf32>
    tpu.vector_store %arg4[%c0_5, %c0_6], %5 {strides = array<i32>} : memref<32x128xf32, #tpu.memory_space<vmem>>, vector<32x128xf32>,
    return
  }
  func.func @transform_0(%arg0: i32) -> (i32, i32) {
    %c0_i32 = arith.constant 0 : i32
    %c0_i32_0 = arith.constant 0 : i32
    return %arg0, %c0_i32 : i32, i32
  }
  func.func @transform_1(%arg0: i32) -> (i32, i32) {
    %c0_i32 = arith.constant 0 : i32
    %c0_i32_0 = arith.constant 0 : i32
    %c0_i32_1 = arith.constant 0 : i32
    return %c0_i32, %c0_i32_0 : i32, i32
  }
  func.func @transform_2(%arg0: i32) -> (i32, i32) {
    %c0_i32 = arith.constant 0 : i32
    %c0_i32_0 = arith.constant 0 : i32
    %c0_i32_1 = arith.constant 0 : i32
    return %c0_i32, %c0_i32_0 : i32, i32
  }
  func.func @transform_3(%arg0: i32) -> (i32, i32) {
    %c0_i32 = arith.constant 0 : i32
    %c0_i32_0 = arith.constant 0 : i32
    return %arg0, %c0_i32 : i32, i32
  }
}

</mosaic_0001>

<bundles_post_ra>
// kernel: patch_embed_forward.1
= control target key start
LH: loop header
LB: loop body
LE: loop exit
PB: predicated region body
PF: predicated region fallthrough
CT: control target
= control target key end

     0   :  { %s297_s0 = inlined_call_operand.vmem [shape: f32[32,64], index: 0, kind: input, shape index: {}]   ;;  %s298_s1 = inlined_call_operand.vmem [shape: f32[64,128], index: 1, kind: input, shape index: {}]   ;;  %s299_s2 = inlined_call_operand.vmem [shape: f32[1,128], index: 2, kind: input, shape index: {}]   ;;  %s300_s3 = inlined_call_operand.hbm [shape: f32[32,128], index: 3, kind: output, shape index: {}]  }
   0x1   :  { %v26_v0 = vld [vmem:[%s298_s1 + $0x38] sm:$0xff]  ;;  %v25_v1 = vld [vmem:[%s298_s1 + $0x30] sm:$0xff]  ;;  %v24_v2 = vld [vmem:[%s298_s1 + $0x28] sm:$0xff] }
   0x2   :  { %169 = vmatprep.subr.mxu0 %v26_v0  ;;  %191 = vmatprep.subr.mxu1 %v26_v0  ;;  %v23_v3 = vld [vmem:[%s298_s1 + $0x20] sm:$0xff] }
   0x3   :  { %170 = vmatpush3.msra.mxu0 %v26_v0  ;;  %199 = vmatpush3.msra.mxu1 %v26_v0 }
   0x4   :  { %171 = vmatprep.subr.mxu0 %v25_v1  ;;  %192 = vmatprep.subr.mxu1 %v25_v1 }
   0x5   :  { %172 = vmatpush3.msra.mxu0 %v25_v1  ;;  %200 = vmatpush3.msra.mxu1 %v25_v1 }
   0x6   :  { %8 = vsyncpa [#allocation3], 0  ;;  %173 = vmatprep.subr.mxu0 %v24_v2  ;;  %193 = vmatprep.subr.mxu1 %v24_v2  ;;  %v22_v4 = vld [vmem:[%s298_s1 + $0x18] sm:$0xff]  ;;  %v21_v5 = vld [vmem:[%s298_s1 + $0x10] sm:$0xff]  ;;  %vm34_vm0 = vcmask 523264   ;;  %s232_s10 = smov [#allocation2]  }
   0x7   :  { %174 = vmatpush3.msra.mxu0 %v24_v2  ;;  %201 = vmatpush3.msra.mxu1 %v24_v2  ;;  %v20_v6 = vld [vmem:[%s298_s1 + $0x8] sm:$0xff]  ;;  %v19_v7 = vld [vmem:[%s298_s1] sm:$0xff]  ;;  %v17_v9 = vld [vmem:[%s297_s0 + $0x10] sm:$0xff]  ;;  %s141_s11 = sshll.u32 %s232_s10, 4  ;;  %s142_s11 = int_to_ptr.vmem [resolvable:$true] %s141_s11 }
   0x8   :  { %175 = vmatprep.subr.mxu0 %v23_v3  ;;  %194 = vmatprep.subr.mxu1 %v23_v3  ;;  %v15_v8 = vld [vmem:[%s297_s0] sm:$0xff]  ;;  %v16_v10 = vld [vmem:[%s297_s0 + $0x8] sm:$0xff]  ;;  %v18_v11 = vld [vmem:[%s297_s0 + $0x18] sm:$0xff]  ;;  %s210_s0 = scalar_lea.vmem %s142_s11, 512  ;;  %p215_p1 = scmp.lt.s32.totalorder %s142_s11, %s142_s11 }
   0x9   :  { %176 = vmatpush3.msra.mxu0 %v23_v3  ;;  %202 = vmatpush3.msra.mxu1 %v23_v3  ;;  %v152_v12 = vld [vmem:[%s299_s2] ss:$0 sm:$0xff]  ;;  %p211_p0 = scmp.ne.s32.totalorder %s142_s11, %s210_s0  ;;  %p216_p2 = scmp.lt.s32.totalorder %s210_s0, %s210_s0 }
   0xa   :  { %177 = vmatprep.subr.mxu0 %v22_v4  ;;  %195 = vmatprep.subr.mxu1 %v22_v4 }
   0xb   :  { %178 = vmatpush3.msra.mxu0 %v22_v4  ;;  %203 = vmatpush3.msra.mxu1 %v22_v4  ;;  %p217_p3 = por %p216_p2, %p215_p1 }
   0xc   :  { %179 = vmatprep.subr.mxu0 %v21_v5  ;;  %196 = vmatprep.subr.mxu1 %v21_v5 }
   0xd   :  { %180 = vmatpush3.msra.mxu0 %v21_v5  ;;  %204 = vmatpush3.msra.mxu1 %v21_v5  ;;  %p218_p4 = pnand %p217_p3, %p211_p0 }
   0xe   :  { %181 = vmatprep.subr.mxu0 %v20_v6  ;;  %197 = vmatprep.subr.mxu1 %v20_v6 }
   0xf   :  { %182 = vmatpush3.msra.mxu0 %v20_v6  ;;  %205 = vmatpush3.msra.mxu1 %v20_v6 }
  0x10   :  { %183 = vmatprep.subr.mxu0 %v19_v7  ;;  %198 = vmatprep.subr.mxu1 %v19_v7 }
  0x11   :  { %184 = vmatpush3.msra.mxu0 %v19_v7  ;;  %206 = vmatpush3.msra.mxu1 %v19_v7 }
  0x12   :  { %185 = vmatprep.mubr.msk.f32.mxu0 %vm34_vm0, %v15_v8  ;;  %188 = vmatprep.mubr.msk.f32.mxu1 %vm34_vm0, %v17_v9 }
  0x13   :  { %186 = vmatmul.mubr.msk.f32.vlgmr.msra.gmra.mxu0 %vm34_vm0, %v16_v10  ;;  %189 = vmatmul.mubr.msk.f32.vlgmr.msra.gmra.mxu1 %vm34_vm0, %v18_v11 }
  0xd3   :  { %v187_v13 = vpop.f32.mrf.mxu0  ;;  %v190_v14 = vpop.f32.mrf.mxu1 }
  0xd4   :  { %v119_v15 = vadd.f32 %v187_v13, %v152_v12  ;;  %v129_v16 = vadd.f32 %v190_v14, %v152_v12 }
  0xd5   :  { %v113_v17 = vpop.f32.mrf.mxu0  ;;  %v123_v18 = vpop.f32.mrf.mxu1 }
  0xd6   :  { %133 = vst [vmem:[#allocation2 + $0x8] sm:$0xff] %v119_v15  ;;  %135 = vst [vmem:[#allocation2 + $0x18] sm:$0xff] %v129_v16  ;;  %v114_v19 = vadd.f32 %v152_v12, %v113_v17  ;;  %v124_v20 = vadd.f32 %v152_v12, %v123_v18 }
  0xd8   :  { %132 = vst [vmem:[#allocation2] sm:$0xff] %v114_v19  ;;  %134 = vst [vmem:[#allocation2 + $0x10] sm:$0xff] %v124_v20 }
  0xd9   :  { %221 = shalt.err (!%p218_p4)
}
  0xda   :  { %s233_s2 = smov 128   ;;  %s234_s12 = smov 8  }
  0xdb   :  { %147 = dma.vmem_to_hbm [thread:$0]  %s142_s11, 512, %s300_s3, [#allocation3], %s233_s2, %s233_s2, %s234_s12  }
  0xdc   :  { %230 = dma.done.wait [#allocation3], 512  }
  0xdd   :  { %231 = vsyncadd [#allocation3], 4294966784 }
  0xde   :  { %151 = vsyncpa [#allocation3], 1 }

</bundles_post_ra>
